<compile_context>
chip_gen: v7x
topology: tpu7x:2x2x1
jax: 0.10.0
libtpu: 0.0.40
codegen_flags: <defaults>
</compile_context>

<pallas_src>
import functools

import jax
import jax.numpy as jnp
import numpy as np
from jax import lax
from jax.experimental import pallas as pl
from jax.experimental.pallas import tpu as pltpu

LEAKY_SLOPE = 0.1
BN_EPS = 1e-5


def _leaky(x):
    # max-form LeakyReLU: 2 VALU ops instead of cmp+mul+select.
    return jnp.maximum(x, LEAKY_SLOPE * x)


# ---------------------------------------------------------------------------
# Tiny one-time capability probes (cached).  They keep the kernel robust to
# convention/feature differences without giving up the optimizations.
# ---------------------------------------------------------------------------
@functools.lru_cache(maxsize=None)
def _roll_matches_jnp() -> bool:
    """Normalize pltpu.roll's shift-direction convention against jnp.roll."""
    def probe(x_ref, o_ref):
        o_ref[...] = pltpu.roll(x_ref[...], 1, 1)

    x = jnp.arange(8 * 128, dtype=jnp.int32).reshape(8, 128)
    y = pl.pallas_call(
        probe, out_shape=jax.ShapeDtypeStruct((8, 128), jnp.int32))(x)
    return int(y[0, 1]) == int(x[0, 0])   # jnp.roll(x,1,1)[0,1] == x[0,0]


@functools.lru_cache(maxsize=None)
def _bf16_roll_supported() -> bool:
    """Can we lane-roll bf16 tiles directly (cast once, roll/mask in bf16)?"""
    def probe(x_ref, o_ref):
        o_ref[...] = pltpu.roll(x_ref[...], 1, 1)

    try:
        x = jnp.zeros((16, 128), jnp.bfloat16)
        y = pl.pallas_call(
            probe, out_shape=jax.ShapeDtypeStruct((16, 128), jnp.bfloat16))(x)
        jax.block_until_ready(y)
        return True
    except Exception:
        return False


@functools.lru_cache(maxsize=None)
def _single_buffering_supported() -> bool:
    """Is pl.Buffered(1) accepted for constant-index operands?"""
    def probe(x_ref, o_ref):
        o_ref[...] = x_ref[...] + 1.0

    try:
        x = jnp.zeros((8, 128), jnp.float32)
        y = pl.pallas_call(
            probe,
            out_shape=jax.ShapeDtypeStruct((8, 128), jnp.float32),
            grid=(2,),
            in_specs=[pl.BlockSpec((8, 128), lambda g: (0, 0),
                                   pipeline_mode=pl.Buffered(1))],
            out_specs=pl.BlockSpec((8, 128), lambda g: (0, 0)),
        )(x)
        jax.block_until_ready(y)
        return True
    except Exception:
        return False


@functools.lru_cache(maxsize=None)
def _vmem_limit_bytes() -> int:
    """~3/4 of the chip's physical VMEM (48 MiB on v7x, 96 MiB on v5e/v6e)."""
    try:
        cap = pltpu.get_tpu_info().vmem_capacity_bytes
    except Exception:
        cap = 64 * 1024 * 1024
    return int(max(32 * 1024 * 1024, min(cap * 3 // 4, 100 * 1024 * 1024)))


# ---------------------------------------------------------------------------
# Static 3x3 (padding=1) tap construction on the flattened spatial axis.
# ---------------------------------------------------------------------------
@functools.lru_cache(maxsize=None)
def _conv3x3_tap_shifts(H, W, roll_matches_jnp):
    """Lane-roll amounts so that tap[t][:, i] = h[:, i + (dy-1)*W + (dx-1)]."""
    HW = H * W
    shifts = []
    for dy in range(3):
        for dx in range(3):
            s = (dy - 1) * W + (dx - 1)          # flat offset of the source
            k = (-s) % HW if roll_matches_jnp else s % HW
            shifts.append(int(k))
    return tuple(shifts)


@functools.lru_cache(maxsize=None)
def _conv3x3_tap_masks(H, W):
    """(9, 1, H*W) bf16 border-validity masks for the padding=1 taps."""
    HW = H * W
    idx = np.arange(HW)
    row, col = idx // W, idx % W
    m = np.zeros((9, 1, HW), np.float32)
    for dy in range(3):
        for dx in range(3):
            rr, cc = row + dy - 1, col + dx - 1
            valid = (rr >= 0) & (rr < H) & (cc >= 0) & (cc < W)
            m[dy * 3 + dx, 0, :] = valid.astype(np.float32)
    return jnp.asarray(m, dtype=jnp.bfloat16)   # 0.0 / 1.0 are exact in bf16


# ---------------------------------------------------------------------------
# Kernel: one (image n, repeat r) grid step of
#   1x1 conv -> BN -> LeakyReLU -> 3x3 conv -> BN -> LeakyReLU -> (+residual)
# BN scale is pre-folded into the weights; only bias + leaky remain here.
# ---------------------------------------------------------------------------
def _residual_block_kernel(x_ref, w1_ref, b1_ref, w2_ref, b2_ref, mask_ref,
                           o_ref, carry_ref, patches_ref, *,
                           cm, tap_shifts, use_residual, taps_in_bf16):
    # x_ref/o_ref : (C, HW)       activation block (channels-first, flat)
    # w1_ref      : (Cm, C)  bf16 1x1 conv weights with BN1 scale folded in
    # w2_ref      : (C, 9*Cm) bf16 3x3 conv weights (tap-major) w/ BN2 scale
    # b1/b2       : (Cm,1)/(C,1) f32 folded BN biases
    # mask_ref    : (9, 1, HW) bf16 border masks
    # carry_ref   : (C, HW) f32 residual carrier, resident across r
    # patches_ref : (9*Cm, HW) bf16 im2col-style patches scratch
    r = pl.program_id(1)

    @pl.when(r == 0)
    def _():
        carry_ref[...] = x_ref[...].astype(jnp.float32)

    x_f = carry_ref[...]                                          # (C, HW) f32

    # --- CNNBlock #1: 1x1 conv == channel matmul (BN scale in w1) + bias ---
    h = jnp.dot(w1_ref[...], x_f.astype(jnp.bfloat16),
                preferred_element_type=jnp.float32)                # (Cm, HW)
    h = _leaky(h + b1_ref[...])

    # --- CNNBlock #2: 3x3 conv (pad=1) as ONE K=9*Cm matmul over
    #     lane-rolled, border-masked bf16 taps written into VMEM scratch ---
    h_src = h.astype(jnp.bfloat16) if taps_in_bf16 else h
    for t, k in enumerate(tap_shifts):
        tap = pltpu.roll(h_src, k, 1) if k else h_src
        if not taps_in_bf16:
            tap = tap.astype(jnp.bfloat16)
        patches_ref[pl.ds(t * cm, cm), :] = tap * mask_ref[t]
    y = jnp.dot(w2_ref[...], patches_ref[...],
                preferred_element_type=jnp.float32)                # (C, HW)
    y = _leaky(y + b2_ref[...])

    out = x_f + y if use_residual else y
    carry_ref[...] = out

    @pl.when(r == pl.num_programs(1) - 1)
    def _():
        o_ref[...] = out.astype(o_ref.dtype)


def residual_block_forward(x_nchw, packed, use_residual=True):
    """ResidualBlock.forward.  grid = (images, repeats); the activation is
    DMA'd once per image and carried across repeats in a VMEM scratch."""
    N, C, H, W = x_nchw.shape
    HW = H * W
    R, Cm, _ = packed["w1"].shape
    x = x_nchw.reshape(N, C, HW)                      # free reshape

    masks = _conv3x3_tap_masks(H, W)
    shifts = _conv3x3_tap_shifts(H, W, _roll_matches_jnp())

    kernel = functools.partial(
        _residual_block_kernel,
        cm=Cm, tap_shifts=shifts, use_residual=use_residual,
        taps_in_bf16=_bf16_roll_supported())

    # Masks have a constant index_map -> single-buffer them when supported.
    mask_spec_kwargs = {}
    if _single_buffering_supported():
        mask_spec_kwargs["pipeline_mode"] = pl.Buffered(1)

    out = pl.pallas_call(
        kernel,
        out_shape=jax.ShapeDtypeStruct((N, C, HW), x_nchw.dtype),
        grid_spec=pltpu.PrefetchScalarGridSpec(
            num_scalar_prefetch=0,
            grid=(N, R),                               # repeats innermost
            in_specs=[
                pl.BlockSpec((None, C, HW), lambda n, r: (n, 0, 0)),
                pl.BlockSpec((None, Cm, C), lambda n, r: (r, 0, 0)),
                pl.BlockSpec((None, Cm, 1), lambda n, r: (r, 0, 0)),
                pl.BlockSpec((None, C, 9 * Cm), lambda n, r: (r, 0, 0)),
                pl.BlockSpec((None, C, 1), lambda n, r: (r, 0, 0)),
                pl.BlockSpec((9, 1, HW), lambda n, r: (0, 0, 0),
                             **mask_spec_kwargs),
            ],
            out_specs=pl.BlockSpec((None, C, HW), lambda n, r: (n, 0, 0)),
            scratch_shapes=[
                pltpu.VMEM((C, HW), jnp.float32),        # residual carrier
                pltpu.VMEM((9 * Cm, HW), jnp.bfloat16),  # bf16 patches
            ]),
        compiler_params=pltpu.CompilerParams(
            dimension_semantics=("parallel", "arbitrary"),
            vmem_limit_bytes=_vmem_limit_bytes()),
    )(x, packed["w1"], packed["b1"], packed["w2"], packed["b2"], masks)
    return out.reshape(N, C, H, W)


# ---------------------------------------------------------------------------
# Parameter preparation (PyTorch-convention -> kernel layout).
# All repeats must share identical (C, Cm) — as in the PyTorch module.
# ---------------------------------------------------------------------------
def fold_bn(gamma, beta, mean, var, eps=BN_EPS):
    scale = gamma / jnp.sqrt(var + eps)
    bias = beta - mean * scale
    return scale, bias


def prepare_params(raw_params, compute_dtype=jnp.bfloat16):
    w1s, b1s, w2s, b2s = [], [], [], []
    for p in raw_params:
        Cm, C = p["w1"].shape[0], p["w1"].shape[1]
        s1, b1 = fold_bn(p["g1"], p["beta1"], p["m1"], p["v1"])
        s2, b2 = fold_bn(p["g2"], p["beta2"], p["m2"], p["v2"])
        # Fold BN scale into conv weights in f32, THEN cast to bf16.
        w1 = p["w1"][:, :, 0, 0].astype(jnp.float32) * s1[:, None]      # (Cm,C)
        # (C, Cm, 3, 3) -> (C, 3, 3, Cm) -> (C, 9*Cm), tap-major (dy,dx)-order
        w2 = jnp.transpose(p["w2"], (0, 2, 3, 1)).reshape(C, 9 * Cm)
        w2 = w2.astype(jnp.float32) * s2[:, None]                        # (C,9Cm)
        w1s.append(w1); w2s.append(w2)
        b1s.append(b1.reshape(-1, 1)); b2s.append(b2.reshape(-1, 1))
    return dict(
        w1=jnp.stack(w1s).astype(compute_dtype),
        w2=jnp.stack(w2s).astype(compute_dtype),
        b1=jnp.stack(b1s).astype(jnp.float32),
        b2=jnp.stack(b2s).astype(jnp.float32))


# ---------------- pure-JAX reference (for correctness check) ----------------
def _bn_eval(x, gamma, beta, mean, var, eps=BN_EPS):
    sh = (1, -1, 1, 1)
    return ((x - mean.reshape(sh)) / jnp.sqrt(var.reshape(sh) + eps)
            * gamma.reshape(sh) + beta.reshape(sh))


def reference_forward(x, raw_params, use_residual=True):
    dn = ("NCHW", "OIHW", "NCHW")
    for p in raw_params:
        h = lax.conv_general_dilated(x, p["w1"], (1, 1), "VALID",
                                     dimension_numbers=dn,
                                     precision=lax.Precision.HIGHEST)
        h = _leaky(_bn_eval(h, p["g1"], p["beta1"], p["m1"], p["v1"]))
        y = lax.conv_general_dilated(h, p["w2"], (1, 1), "SAME",
                                     dimension_numbers=dn,
                                     precision=lax.Precision.HIGHEST)
        y = _leaky(_bn_eval(y, p["g2"], p["beta2"], p["m2"], p["v2"]))
        x = x + y if use_residual else y
    return x


if __name__ == "__main__":
    N, C, H, W = 2, 32, 16, 16
    num_repeats = 2
    Cm = C // 2

    key = jax.random.PRNGKey(0)
    keys = jax.random.split(key, 1 + num_repeats * 10)

    x_nchw = jax.random.normal(keys[0], (N, C, H, W), jnp.float32)

    raw_params = []
    ki = 1
    for _ in range(num_repeats):
        w1 = 0.1 * jax.random.normal(keys[ki], (Cm, C, 1, 1)); ki += 1
        g1 = 1.0 + 0.1 * jax.random.normal(keys[ki], (Cm,)); ki += 1
        beta1 = 0.1 * jax.random.normal(keys[ki], (Cm,)); ki += 1
        m1 = 0.1 * jax.random.normal(keys[ki], (Cm,)); ki += 1
        v1 = 1.0 + 0.1 * jax.random.uniform(keys[ki], (Cm,)); ki += 1
        w2 = 0.1 * jax.random.normal(keys[ki], (C, Cm, 3, 3)); ki += 1
        g2 = 1.0 + 0.1 * jax.random.normal(keys[ki], (C,)); ki += 1
        beta2 = 0.1 * jax.random.normal(keys[ki], (C,)); ki += 1
        m2 = 0.1 * jax.random.normal(keys[ki], (C,)); ki += 1
        v2 = 1.0 + 0.1 * jax.random.uniform(keys[ki], (C,)); ki += 1
        raw_params.append(dict(w1=w1, g1=g1, beta1=beta1, m1=m1, v1=v1,
                               w2=w2, g2=g2, beta2=beta2, m2=m2, v2=v2))

    packed = prepare_params(raw_params)

    out = residual_block_forward(x_nchw, packed, use_residual=True)
    out = jax.block_until_ready(out)

    ref = reference_forward(x_nchw, raw_params, use_residual=True)
    np.testing.assert_allclose(np.asarray(out), np.asarray(ref),
                               rtol=2e-2, atol=2e-2)
    print("KERNEL_OK")
</pallas_src>

<mosaic_0001>
module attributes {stable_mosaic.version = 11 : i64} {
  func.func @probe(%arg0: memref<8x128xi32, #tpu.memory_space<vmem>>, %arg1: memref<8x128xi32, #tpu.memory_space<vmem>>) attributes {dimension_semantics = [], scalar_prefetch = 0 : i64, scratch_operands = 0 : i64, tpu.core_type = #tpu.core_type<tc>} {
    %c0 = arith.constant 0 : index
    %c0_0 = arith.constant 0 : index
    %0 = vector.load %arg0[%c0, %c0_0] : memref<8x128xi32, #tpu.memory_space<vmem>>, vector<8x128xi32>
    %c1_i32 = arith.constant 1 : i32
    %1 = tpu.dynamic_rotate %0 by %c1_i32 dim 1 : vector<8x128xi32>, i32 -> vector<8x128xi32>
    %c0_1 = arith.constant 0 : index
    %c0_2 = arith.constant 0 : index
    %2 = vector.load %arg1[%c0_1, %c0_2] : memref<8x128xi32, #tpu.memory_space<vmem>>, vector<8x128xi32>
    tpu.vector_store %arg1[%c0_1, %c0_2], %1 {strides = array<i32>} : memref<8x128xi32, #tpu.memory_space<vmem>>, vector<8x128xi32>,
    return
  }
}

</mosaic_0001>

<bundles_post_ra>
// kernel: tpu_custom_call.1
= control target key start
LH: loop header
LB: loop body
LE: loop exit
PB: predicated region body
PF: predicated region fallthrough
CT: control target
= control target key end

     0   :  { %6 = vsyncpa [#allocation3], 0  ;;  %s128_s0 = inlined_call_operand.hbm [shape: s32[8,128], index: 0, kind: input, shape index: {}]   ;;  %s129_s1 = inlined_call_operand.hbm [shape: s32[8,128], index: 1, kind: output, shape index: {}]  }
   0x1   :  { %7 = vsyncpa [#allocation4], 0  ;;  %s91_s6 = smov [#allocation2]   ;;  %s43_s10 = scalar_lea.hbm %s128_s0, 128 }
   0x2   :  { %s14_s7 = sshll.u32 %s91_s6, 4  ;;  %p44_p0 = scmp.ne.s32.totalorder %s128_s0, %s43_s10  ;;  %s15_s7 = int_to_ptr.vmem [resolvable:$true] %s14_s7 }
   0x3   :  { %p47_p1 = scmp.lt.u32.totalorder %s43_s10, %s128_s0 }
   0x5   :  { %p49_p2 = pnand %p47_p1, %p44_p0 }
   0x7   :  { %52 = shalt.err (!%p49_p2)
}
   0x8   :  { %s53_s15 = scalar_lea.vmem %s15_s7, 128  ;;  %p58_p4 = scmp.lt.s32.totalorder %s15_s7, %s15_s7 }
   0x9   :  { %p54_p3 = scmp.ne.s32.totalorder %s15_s7, %s53_s15  ;;  %p59_p5 = scmp.lt.s32.totalorder %s53_s15, %s53_s15 }
   0xb   :  { %p60_p6 = por %p59_p5, %p58_p4 }
   0xd   :  { %p61_p7 = pnand %p60_p6, %p54_p3 }
   0xf   :  { %64 = shalt.err (!%p61_p7)
}
  0x10   :  { %17 = dma.hbm_to_vmem [thread:$0]  %s128_s0, 128, %s15_s7, [#allocation3]  }
  0x11   :  { %87 = dma.done.wait [#allocation3], 128  }
  0x12   :  { %88 = vsyncadd [#allocation3], 4294967168  ;;  %v21_v0 = vld [vmem:[#allocation2] sm:$0xff]  ;;  %s92_s18 = smov 1   ;;  %s93_s19 = smov [#allocation5]  }
  0x13   :  { %22 = vrot.lane.b32.xlu0 %v21_v0, %s92_s18  ;;  %s31_s20 = sshll.u32 %s93_s19, 4  ;;  %s32_s20 = int_to_ptr.vmem [resolvable:$true] %s31_s20 }
  0x14   :  { %s65_s21 = scalar_lea.vmem %s32_s20, 128  ;;  %p70_p9 = scmp.lt.s32.totalorder %s32_s20, %s32_s20 }
  0x15   :  { %p66_p8 = scmp.ne.s32.totalorder %s32_s20, %s65_s21  ;;  %p71_p10 = scmp.lt.s32.totalorder %s65_s21, %s65_s21 }
  0x17   :  { %p72_p11 = por %p71_p10, %p70_p9 }
  0x19   :  { %p73_p12 = pnand %p72_p11, %p66_p8 }
  0x85   :  { %v23_v1 = vpop.permute.xlu0 %22 }
  0x86   :  { %24 = vst [vmem:[#allocation5] sm:$0xff] %v23_v1 }
  0x87   :  { %76 = shalt.err (!%p73_p12)
}
  0x88   :  { %s77_s0 = scalar_lea.hbm %s129_s1, 128 }
  0x89   :  { %p78_p13 = scmp.ne.s32.totalorder %s129_s1, %s77_s0  ;;  %p81_p0 = scmp.lt.u32.totalorder %s77_s0, %s129_s1 }
  0x8b   :  { %p83_p1 = pnand %p81_p0, %p78_p13 }
  0x8d   :  { %86 = shalt.err (!%p83_p1)
}
  0x8e   :  { %34 = dma.vmem_to_hbm [thread:$0]  %s32_s20, 128, %s129_s1, [#allocation4]  }
  0x8f   :  { %89 = dma.done.wait [#allocation4], 128  }
  0x90   :  { %90 = vsyncadd [#allocation4], 4294967168 }
  0x91   :  { %38 = vsyncpa [#allocation3], 1 }
  0x92   :  { %39 = vsyncpa [#allocation4], 1 }

</bundles_post_ra>
